<compile_context>
chip_gen: v7x
topology: tpu7x:2x2x1
jax: 0.10.0
libtpu: 0.0.40
codegen_flags: <defaults>
</compile_context>

<pallas_src>
import math

import jax
import jax.numpy as jnp
import numpy as np
from jax.experimental import pallas as pl
from jax.experimental.pallas import tpu as pltpu


def _pe_kernel(sigma_ref, phase_ref, route_ref, x_ref, o_ref):
    """x_ref: (T, cin) -> o_ref: (T, cin*2*ll).

    sigma_ref/phase_ref: (1, cout) f32; route_ref: (3*cin, cout) bf16 0/1.
    Output column c holds sin(x[:, c//(2*ll)] * sigma[c] + phase[c]).
    """
    f32 = jnp.float32
    x = x_ref[...].astype(f32)

    # 3-way bf16-exact split of x so the bf16 MXU routing matmul below
    # (f32 accumulate) reconstructs x exactly in each expanded lane.
    h1 = x.astype(jnp.bfloat16).astype(f32)
    r1 = x - h1
    h2 = r1.astype(jnp.bfloat16).astype(f32)
    h3 = r1 - h2
    h = jnp.concatenate([h1, h2, h3], axis=1).astype(jnp.bfloat16)  # (T, 3*cin)

    # Single MXU pass: lane expansion via 0/1 routing matrix.
    x_rep = jnp.dot(h, route_ref[...], preferred_element_type=f32)  # (T, cout)

    # One transcendental pass (cos(z) = sin(z + pi/2)); one lane-dense store.
    o_ref[...] = jnp.sin(x_rep * sigma_ref[...] + phase_ref[...]).astype(o_ref.dtype)


def fixed_positional_encoding(x: jax.Array, proj_dims: int, *,
                              tile_rows: int = 2048, out_dtype=None):
    """x: (B, D1, D2, D3) -> (B, D1, D2, D3 * 2 * (proj_dims // 2))."""
    b, d1, d2, d3 = x.shape
    ll = proj_dims // 2
    two_ll = 2 * ll
    out_cols = d3 * two_ll
    out_dtype = x.dtype if out_dtype is None else out_dtype
    n = b * d1 * d2

    # Group rows so the output block's last dim is a multiple of 128 lanes.
    g = 128 // math.gcd(out_cols, 128)
    pad = (-n) % g
    x_rows = x.reshape(n, d3)
    if pad:
        x_rows = jnp.pad(x_rows, ((0, pad), (0, 0)))
    n_pad = n + pad
    ng = n_pad // g
    cin = g * d3
    cout = g * out_cols
    x_grp = x_rows.reshape(ng, cin)          # row-major regroup, no data movement

    # ---- constants (built once on host, DMA'd once into VMEM) ----
    col = np.arange(cout)
    j = col % two_ll
    k = np.where(j < ll, j, j - ll)
    sigma_full = (math.pi * np.exp2(k.astype(np.float64))).astype(np.float32)
    sigma_full = jnp.asarray(sigma_full.reshape(1, cout))
    phase = jnp.asarray(
        np.where(j < ll, 0.0, math.pi / 2.0).astype(np.float32).reshape(1, cout))
    route = (col[None, :] // two_ll == np.arange(cin)[:, None]).astype(np.float32)
    route3 = jnp.asarray(np.concatenate([route, route, route], axis=0),
                         dtype=jnp.bfloat16)                     # (3*cin, cout)

    # ---- tiling ----
    tile = max(1, min(ng, tile_rows))
    if tile != ng:
        tile = max(8, (tile // 8) * 8)       # keep second-minor block dim 8-aligned
    grid = (pl.cdiv(ng, tile),)              # ragged tail masked by Pallas

    out_grp = pl.pallas_call(
        _pe_kernel,
        out_shape=jax.ShapeDtypeStruct((ng, cout), out_dtype),
        grid=grid,
        in_specs=[
            pl.BlockSpec((1, cout), lambda i: (0, 0)),           # sigma (resident)
            pl.BlockSpec((1, cout), lambda i: (0, 0)),           # phase (resident)
            pl.BlockSpec((3 * cin, cout), lambda i: (0, 0)),     # route (resident)
            pl.BlockSpec((tile, cin), lambda i: (i, 0)),         # x tile
        ],
        out_specs=pl.BlockSpec((tile, cout), lambda i: (i, 0)),
        compiler_params=pltpu.CompilerParams(
            dimension_semantics=("parallel",),
            vmem_limit_bytes=48 * 1024 * 1024),
    )(sigma_full, phase, route3, x_grp)

    out = out_grp.reshape(n_pad, out_cols)
    if pad:
        out = out[:n]
    return out.reshape(b, d1, d2, out_cols)


def _reference(x, proj_dims):
    ll = proj_dims // 2
    sigma = (math.pi * jnp.power(2.0, jnp.linspace(0.0, ll - 1, ll))).astype(x.dtype)
    prod = x[..., None] * sigma
    out = jnp.concatenate([jnp.sin(prod), jnp.cos(prod)], axis=-1)
    return out.reshape(x.shape[0], x.shape[1], x.shape[2], -1)


if __name__ == "__main__":
    # TODO(synk): ProjectionLayer's nn.Linear stack is unused by this forward.
    input_dims, proj_dims = 3, 8            # ll = 4, output last dim = 24
    B, D1, D2, D3 = 2, 4, 16, input_dims    # B*D1*D2 = 128 rows -> 8 grouped rows

    key = jax.random.PRNGKey(0)
    x = jax.random.uniform(key, (B, D1, D2, D3), dtype=jnp.float32)

    out = jax.block_until_ready(fixed_positional_encoding(x, proj_dims))
    ref = _reference(x, proj_dims)
    assert out.shape == (B, D1, D2, D3 * 2 * (proj_dims // 2)), out.shape
    np.testing.assert_allclose(np.asarray(out), np.asarray(ref), atol=1e-3, rtol=1e-3)

    # Awkward row count (exercises the row-padding path instead of g=1 fallback).
    x2 = jax.random.uniform(jax.random.PRNGKey(0), (1, 3, 5, D3), dtype=jnp.float32)
    out2 = jax.block_until_ready(fixed_positional_encoding(x2, proj_dims))
    np.testing.assert_allclose(np.asarray(out2), np.asarray(_reference(x2, proj_dims)),
                               atol=1e-3, rtol=1e-3)

    print("KERNEL_OK")
</pallas_src>

<mosaic_0001>
module attributes {stable_mosaic.version = 11 : i64} {
  func.func @_pe_kernel(%arg0: i32, %arg1: memref<1x384xf32, #tpu.memory_space<vmem>>, %arg2: memref<1x384xf32, #tpu.memory_space<vmem>>, %arg3: memref<144x384xbf16, #tpu.memory_space<vmem>>, %arg4: memref<8x48xf32, #tpu.memory_space<vmem>>, %arg5: memref<8x384xf32, #tpu.memory_space<vmem>>) attributes {dimension_semantics = [#tpu.dimension_semantics<parallel>], iteration_bounds = array<i64: 1>, scalar_prefetch = 0 : i64, scratch_operands = 0 : i64, tpu.core_type = #tpu.core_type<tc>, window_params = [{pipeline_mode = #tpu.pipeline_mode<synchronous>, transform_indices = @transform_0, window_bounds = array<i64: 1, 384>}, {pipeline_mode = #tpu.pipeline_mode<synchronous>, transform_indices = @transform_1, window_bounds = array<i64: 1, 384>}, {pipeline_mode = #tpu.pipeline_mode<synchronous>, transform_indices = @transform_2, window_bounds = array<i64: 144, 384>}, {transform_indices = @transform_3, window_bounds = array<i64: 8, 48>}, {transform_indices = @transform_4, window_bounds = array<i64: 8, 384>}]} {
    %c0 = arith.constant 0 : index
    %c0_0 = arith.constant 0 : index
    %0 = vector.load %arg4[%c0, %c0_0] : memref<8x48xf32, #tpu.memory_space<vmem>>, vector<8x48xf32>
    %1 = arith.truncf %0 : vector<8x48xf32> to vector<8x48xbf16>
    %2 = arith.extf %1 : vector<8x48xbf16> to vector<8x48xf32>
    %3 = arith.subf %0, %2 : vector<8x48xf32>
    %4 = arith.truncf %3 : vector<8x48xf32> to vector<8x48xbf16>
    %5 = arith.extf %4 : vector<8x48xbf16> to vector<8x48xf32>
    %6 = arith.subf %3, %5 : vector<8x48xf32>
    %7 = tpu.concatenate %2, %5, %6 in 1 : vector<8x48xf32>, vector<8x48xf32>, vector<8x48xf32> -> vector<8x144xf32>
    %8 = arith.truncf %7 : vector<8x144xf32> to vector<8x144xbf16>
    %c0_1 = arith.constant 0 : index
    %c0_2 = arith.constant 0 : index
    %9 = vector.load %arg3[%c0_1, %c0_2] : memref<144x384xbf16, #tpu.memory_space<vmem>>, vector<144x384xbf16>
    %cst = arith.constant dense<0.000000e+00> : vector<8x384xf32>
    %10 = tpu.matmul %8, %9, %cst {dimension_numbers = #tpu.dot_dimension_numbers<[1], [0], [0], [1], [0, 0, 1, 1], [], []>} : vector<8x144xbf16>, vector<144x384xbf16>, vector<8x384xf32> -> vector<8x384xf32>
    %c0_3 = arith.constant 0 : index
    %c0_4 = arith.constant 0 : index
    %11 = vector.load %arg1[%c0_3, %c0_4] : memref<1x384xf32, #tpu.memory_space<vmem>>, vector<1x384xf32>
    %12 = vector.broadcast %11 : vector<1x384xf32> to vector<8x384xf32>
    %13 = arith.mulf %10, %12 : vector<8x384xf32>
    %c0_5 = arith.constant 0 : index
    %c0_6 = arith.constant 0 : index
    %14 = vector.load %arg2[%c0_5, %c0_6] : memref<1x384xf32, #tpu.memory_space<vmem>>, vector<1x384xf32>
    %15 = vector.broadcast %14 : vector<1x384xf32> to vector<8x384xf32>
    %16 = arith.addf %13, %15 : vector<8x384xf32>
    %17 = math.sin %16 : vector<8x384xf32>
    %c0_7 = arith.constant 0 : index
    %c0_8 = arith.constant 0 : index
    %18 = vector.load %arg5[%c0_7, %c0_8] : memref<8x384xf32, #tpu.memory_space<vmem>>, vector<8x384xf32>
    tpu.vector_store %arg5[%c0_7, %c0_8], %17 {strides = array<i32>} : memref<8x384xf32, #tpu.memory_space<vmem>>, vector<8x384xf32>,
    return
  }
  func.func @transform_0(%arg0: i32) -> (i32, i32) {
    %c0_i32 = arith.constant 0 : i32
    %c0_i32_0 = arith.constant 0 : i32
    %c0_i32_1 = arith.constant 0 : i32
    return %c0_i32, %c0_i32_0 : i32, i32
  }
  func.func @transform_1(%arg0: i32) -> (i32, i32) {
    %c0_i32 = arith.constant 0 : i32
    %c0_i32_0 = arith.constant 0 : i32
    %c0_i32_1 = arith.constant 0 : i32
    return %c0_i32, %c0_i32_0 : i32, i32
  }
  func.func @transform_2(%arg0: i32) -> (i32, i32) {
    %c0_i32 = arith.constant 0 : i32
    %c0_i32_0 = arith.constant 0 : i32
    %c0_i32_1 = arith.constant 0 : i32
    return %c0_i32, %c0_i32_0 : i32, i32
  }
  func.func @transform_3(%arg0: i32) -> (i32, i32) {
    %c0_i32 = arith.constant 0 : i32
    %c0_i32_0 = arith.constant 0 : i32
    return %arg0, %c0_i32 : i32, i32
  }
  func.func @transform_4(%arg0: i32) -> (i32, i32) {
    %c0_i32 = arith.constant 0 : i32
    %c0_i32_0 = arith.constant 0 : i32
    return %arg0, %c0_i32 : i32, i32
  }
}

</mosaic_0001>

<bundles_post_ra>
// kernel: tpu_custom_call.1
= control target key start
LH: loop header
LB: loop body
LE: loop exit
PB: predicated region body
PF: predicated region fallthrough
CT: control target
= control target key end

     0   :  { %9 = vsyncpa [#allocation3], 0  ;;  %s1203_s0 = inlined_call_operand.hbm [shape: f32[1,384], index: 0, kind: input, shape index: {}]   ;;  %s1204_s1 = inlined_call_operand.vmem [shape: f32[1,384], index: 1, kind: input, shape index: {}]   ;;  %s1205_s2 = inlined_call_operand.hbm [shape: bf16[144,384], index: 2, kind: input, shape index: {}]   ;;  %s1206_s3 = inlined_call_operand.vmem [shape: f32[8,48], index: 3, kind: input, shape index: {}]   ;;  %s1207_s4 = inlined_call_operand.hbm [shape: f32[8,384], index: 4, kind: output, shape index: {}]  }
   0x1   :  { %10 = vsyncpa [#allocation6], 0 }
   0x2   :  { %11 = vsyncpa [#allocation4], 0  ;;  %s889_s15 = smov [#allocation2]   ;;  %s890_s17 = smov [#allocation5]  }
   0x3   :  { %s18_s16 = sshll.u32 %s889_s15, 4  ;;  %s29_s18 = sshll.u32 %s890_s17, 4  ;;  %s19_s16 = int_to_ptr.vmem [resolvable:$true] %s18_s16  ;;  %s928_s18 = int_to_ptr.vmem [resolvable:$true] %s29_s18 }
   0x4   :  { %s817_s21 = scalar_lea.hbm %s1203_s0, 48 }
   0x5   :  { %p818_p0 = scmp.ne.s32.totalorder %s1203_s0, %s817_s21  ;;  %p821_p1 = scmp.lt.u32.totalorder %s817_s21, %s1203_s0 }
   0x7   :  { %p823_p2 = pnand %p821_p1, %p818_p0 }
   0x9   :  { %826 = shalt.err (!%p823_p2)
}
   0xa   :  { %s827_s26 = scalar_lea.vmem %s19_s16, 48  ;;  %s831_s27 = scalar_lea.vmem %s19_s16, 64 }
   0xb   :  { %p828_p3 = scmp.ne.s32.totalorder %s19_s16, %s827_s26  ;;  %p832_p4 = scmp.lt.s32.totalorder %s19_s16, %s19_s16 }
   0xc   :  { %p833_p5 = scmp.lt.s32.totalorder %s831_s27, %s827_s26 }
   0xe   :  { %p834_p6 = por %p833_p5, %p832_p4 }
  0x10   :  { %p835_p7 = pnand %p834_p6, %p828_p3 }
  0x12   :  { %838 = shalt.err (!%p835_p7)
}
  0x13   :  { %21 = dma.hbm_to_vmem [thread:$0]  %s1203_s0, 48, %s19_s16, [#allocation3]  }
  0x14   :  { %s839_s6 = scalar_lea.hbm %s1205_s2, 3456 }
  0x15   :  { %p840_p8 = scmp.ne.s32.totalorder %s1205_s2, %s839_s6  ;;  %p843_p9 = scmp.lt.u32.totalorder %s839_s6, %s1205_s2 }
  0x17   :  { %p845_p10 = pnand %p843_p9, %p840_p8 }
  0x19   :  { %848 = shalt.err (!%p845_p10)
}
  0x1a   :  { %s849_s11 = scalar_lea.vmem %s928_s18, 3456  ;;  %p854_p12 = scmp.lt.s32.totalorder %s928_s18, %s928_s18 }
  0x1b   :  { %p850_p11 = scmp.ne.s32.totalorder %s928_s18, %s849_s11  ;;  %p855_p13 = scmp.lt.s32.totalorder %s849_s11, %s849_s11 }
  0x1d   :  { %p856_p0 = por %p855_p13, %p854_p12 }
  0x1f   :  { %p857_p1 = pnand %p856_p0, %p850_p11 }
  0x21   :  { %860 = shalt.err (!%p857_p1)
}
  0x22   :  { %s891_s0 = smov 192   ;;  %s892_s12 = smov 12  }
  0x23   :  { %35 = dma.hbm_to_vmem [thread:$0]  %s1205_s2, 3456, %s928_s18, [#allocation6], %s891_s0, %s891_s0, %s892_s12  }
  0x24   :  { %883 = dma.done.wait [#allocation3], 48  }
  0x25   :  { %884 = vsyncadd [#allocation3], 4294967248 }
  0x26   :  { %885 = dma.done.wait [#allocation6], 3456  }
  0x27   :  { %886 = vsyncadd [#allocation6], 4294963840  ;;  %v893_v0 = vmov 0   ;;  %v45_v1 = vld [vmem:[%s1206_s3] sm:$0xff]  ;;  %v769_v3 = vld [vmem:[#allocation5 + $0x4] ss:$12 sps:$4 sm:$0xff]   ;;  %v333_v41 = vlaneseq }
  0x28   :  { %291 = vmatprep.subr.bf16.mxu1 %v893_v0  ;;  %v46_v2 = vpack.c.bf16 %v45_v1, %v45_v1  ;;  %v771_v4 = vld [vmem:[#allocation5] ss:$12 sps:$4 sm:$0xff]   ;;  %v772_v5 = vld [vmem:[#allocation5 + $0x8] ss:$12 sps:$4 sm:$0xff]   ;;  %250 = vmatprep.subr.bf16.mxu0 %v769_v3  ;;  %v775_v8 = vld [vmem:[#allocation5 + $0x18] ss:$12 sps:$4 sm:$0xff]  }
  0x29   :  { %v773_v7 = vld [vmem:[#allocation5 + $0x1c] ss:$12 sps:$4 sm:$0xff]   ;;  %251 = vmatpush1.bf16.msra.mxu0 %v771_v4  ;;  %292 = vmatpush1.bf16.msra.mxu1 %v772_v5  ;;  %v776_v9 = vld [vmem:[#allocation5 + $0x20] ss:$12 sps:$4 sm:$0xff]   ;;  %v780_v14 = vld [vmem:[#allocation5 + $0x38] ss:$12 sps:$4 sm:$0xff]  }
  0x2a   :  { %v963_v6 = vunpack.c.l.bf16 %v46_v2  ;;  %252 = vmatprep.subr.bf16.mxu0 %v773_v7  ;;  %293 = vmatprep.subr.bf16.mxu1 %v893_v0  ;;  %v777_v11 = vld [vmem:[#allocation5 + $0x34] ss:$12 sps:$4 sm:$0xff]   ;;  %v779_v13 = vld [vmem:[#allocation5 + $0x30] ss:$12 sps:$4 sm:$0xff]   ;;  %v781_v16 = vld [vmem:[#allocation5 + $0x4c] ss:$12 sps:$4 sm:$0xff]  }
  0x2b   :  { %s894_s2 = smov 48   ;;  %v783_v18 = vld [vmem:[#allocation5 + $0x48] ss:$12 sps:$4 sm:$0xff]   ;;  %v784_v19 = vld [vmem:[#allocation5 + $0x50] ss:$12 sps:$4 sm:$0xff]   ;;  %s895_s3 = smov 96  }
  0x2c   :  { %v48_v10 = vsub.f32 %v45_v1, %v963_v6  ;;  %v785_v20 = vld [vmem:[#allocation5 + $0x64] ss:$12 sps:$4 sm:$0xff]   ;;  %v787_v21 = vld [vmem:[#allocation5 + $0x60] ss:$12 sps:$4 sm:$0xff]   ;;  %v788_v22 = vld [vmem:[#allocation5 + $0x68] ss:$12 sps:$4 sm:$0xff]  }
  0x2d   :  { %253 = vmatpush1.bf16.msra.mxu0 %v775_v8  ;;  %294 = vmatpush1.bf16.msra.mxu1 %v776_v9  ;;  %v789_v23 = vld [vmem:[#allocation5 + $0x7c] ss:$12 sps:$4 sm:$0xff]   ;;  %v791_v24 = vld [vmem:[#allocation5 + $0x78] ss:$12 sps:$4 sm:$0xff]   ;;  %v792_v25 = vld [vmem:[#allocation5 + $0x80] ss:$12 sps:$4 sm:$0xff]  }
  0x2e   :  { %v49_v12 = vpack.c.bf16 %v48_v10, %v48_v10  ;;  %254 = vmatprep.subr.bf16.mxu0 %v777_v11  ;;  %295 = vmatprep.subr.bf16.mxu1 %v893_v0  ;;  %v793_v26 = vld [vmem:[#allocation5 + $0x94] ss:$12 sps:$4 sm:$0xff]   ;;  %v795_v27 = vld [vmem:[#allocation5 + $0x90] ss:$12 sps:$4 sm:$0xff]   ;;  %v796_v28 = vld [vmem:[#allocation5 + $0x98] ss:$12 sps:$4 sm:$0xff]  }
  0x2f   :  { %v797_v29 = vld [vmem:[#allocation5 + $0xac] ss:$12 sps:$4 sm:$0xff]   ;;  %v799_v30 = vld [vmem:[#allocation5 + $0xa8] ss:$12 sps:$4 sm:$0xff]   ;;  %v800_v31 = vld [vmem:[#allocation5 + $0xb0] ss:$12 sps:$4 sm:$0xff]  }
  0x30   :  { %v50_v15 = vunpack.c.l.bf16 %v49_v12  ;;  %v801_v32 = vld [vmem:[#allocation5 + $0xc4] ss:$12 sps:$4 sm:$0xff]   ;;  %v803_v33 = vld [vmem:[#allocation5 + $0xc0] ss:$12 sps:$4 sm:$0xff]   ;;  %v804_v34 = vld [vmem:[#allocation5 + $0xc8] ss:$12 sps:$4 sm:$0xff]  }
  0x31   :  { %255 = vmatpush1.bf16.msra.mxu0 %v779_v13  ;;  %296 = vmatpush1.bf16.msra.mxu1 %v780_v14  ;;  %vm60_vm0 = vcmask 392192   ;;  %vm62_vm1 = vcmask 785408   ;;  %vm246_vm2 = vcmask 130048   ;;  %v334_v42 = vshrl.u32 %v333_v41, 7  ;;  %v331_v45 = vld [vmem:[#allocation2] sm:$0x7] }
  0x32   :  { %53 = vrot.lane.b32.xlu0 %v50_v15, %s894_s2  ;;  %v51_v17 = vsub.f32 %v48_v10, %v50_v15  ;;  %256 = vmatprep.subr.bf16.mxu0 %v781_v16  ;;  %v351_v47 = vld [vmem:[%s1204_s1] sm:$0x7]  ;;  %v899_v41 = vmov 2102212464   ;;  %s902_s1 = smov [#allocation7]  }
  0x33   :  { %297 = vmatprep.subr.bf16.mxu1 %v893_v0  ;;  %v335_v43 = vsub.s32 0, %v334_v42  ;;  %v343_v44 = vsub.s32 2, %v334_v42  ;;  %v339_v46 = vsub.s32 1, %v334_v42  ;;  %s692_s19 = sshll.u32 %s902_s1, 4  ;;  %s693_s19 = int_to_ptr.vmem [resolvable:$true] %s692_s19 }
  0x34   :  { %s861_s20 = scalar_lea.vmem %s693_s19, 384  ;;  %p866_p3 = scmp.lt.s32.totalorder %s693_s19, %s693_s19 }
  0x35   :  { %257 = vmatpush1.bf16.msra.mxu0 %v783_v18  ;;  %298 = vmatpush1.bf16.msra.mxu1 %v784_v19  ;;  %v336_v48 = vrot.slane %v331_v45, %v335_v43  ;;  %v344_v49 = vrot.slane %v331_v45, %v343_v44  ;;  %v340_v50 = vrot.slane %v331_v45, %v339_v46  ;;  %p862_p2 = scmp.ne.s32.totalorder %s693_s19, %s861_s20  ;;  %p867_p4 = scmp.lt.s32.totalorder %s861_s20, %s861_s20 }
  0x36   :  { %57 = vrot.lane.b32.xlu0 %v51_v17, %s895_s3  ;;  %258 = vmatprep.subr.bf16.mxu0 %v785_v20  ;;  %v356_v51 = vrot.slane %v351_v47, %v335_v43  ;;  %v364_v52 = vrot.slane %v351_v47, %v343_v44  ;;  %v360_v55 = vrot.slane %v351_v47, %v339_v46  ;;  %v900_v43 = vmov 920167782  }
  0x37   :  { %299 = vmatprep.subr.bf16.mxu1 %v893_v0  ;;  %p868_p5 = por %p867_p4, %p866_p3 }
  0x39   :  { %259 = vmatpush1.bf16.msra.mxu0 %v787_v21  ;;  %300 = vmatpush1.bf16.msra.mxu1 %v788_v22  ;;  %p869_p6 = pnand %p868_p5, %p862_p2 }
  0x3a   :  { %260 = vmatprep.subr.bf16.mxu0 %v789_v23  ;;  %301 = vmatprep.subr.bf16.mxu1 %v893_v0 }
  0x3d   :  { %261 = vmatpush1.bf16.msra.mxu0 %v791_v24  ;;  %302 = vmatpush1.bf16.msra.mxu1 %v792_v25 }
  0x3e   :  { %262 = vmatprep.subr.bf16.mxu0 %v793_v26  ;;  %303 = vmatprep.subr.bf16.mxu1 %v893_v0 }
  0x41   :  { %263 = vmatpush1.bf16.msra.mxu0 %v795_v27  ;;  %304 = vmatpush1.bf16.msra.mxu1 %v796_v28 }
  0x42   :  { %264 = vmatprep.subr.bf16.mxu0 %v797_v29  ;;  %305 = vmatprep.subr.bf16.mxu1 %v893_v0 }
  0x45   :  { %265 = vmatpush1.bf16.msra.mxu0 %v799_v30  ;;  %306 = vmatpush1.bf16.msra.mxu1 %v800_v31 }
  0x46   :  { %266 = vmatprep.subr.bf16.mxu0 %v801_v32  ;;  %307 = vmatprep.subr.bf16.mxu1 %v893_v0 }
  0x49   :  { %267 = vmatpush1.bf16.msra.mxu0 %v803_v33  ;;  %308 = vmatpush1.bf16.msra.mxu1 %v804_v34  ;;  %v896_v34 = vmov 683565275  }
  0xa4   :  { %v54_v35 = vpop.permute.xlu0 %53 }
  0xa5   :  { %v61_v36 = vsel %vm60_vm0, %v963_v6, %v54_v35 }
  0xa8   :  { %v58_v37 = vpop.permute.xlu0 %57 }
  0xa9   :  { %v63_v38 = vsel %vm62_vm1, %v61_v36, %v58_v37  ;;  %v65_v39 = vpack.c.bf16 %v58_v37, %v58_v37  ;;  %v897_v36 = vmov 2475754826  }
  0xaa   :  { %v64_v40 = vpack.c.bf16 %v63_v38, %v63_v38 }
  0xab   :  { %729 = vmatprep.mubr.msk.bf16.mxu0 %vm246_vm2, %v65_v39  ;;  %730 = vmatprep.mubr.msk.bf16.mxu1 %vm246_vm2, %v65_v39  ;;  %v898_v39 = vmov 2131351028  }
  0xac   :  { %283 = vmatmul.mubr.bf16.vlgmr.msra.gmra.mrb[0].mxu0 %v64_v40  ;;  %324 = vmatmul.mubr.bf16.vlgmr.msra.gmra.mrb[0].mxu1 %v64_v40 }
 0x17f   :  { %v284_v53 = vpop.f32.mrb[0].mxu0  ;;  %v325_v54 = vpop.f32.mrb[0].mxu1 }
 0x180   :  { %v348_v56 = vmul.f32 %v336_v48, %v284_v53  ;;  %v350_v57 = vmul.f32 %v344_v49, %v325_v54  ;;  %v286_v58 = vpop.f32.mrb[1].mxu0  ;;  %v327_v59 = vpop.f32.mrb[1].mxu1 }
 0x181   :  { %v349_v60 = vmul.f32 %v340_v50, %v286_v58  ;;  %v288_v61 = vpop.f32.mrb[2].mxu0  ;;  %v328_v62 = vpop.f32.mrb[2].mxu1  ;;  %v901_v50 = vmov 1326507024  }
 0x182   :  { %v978_v63 = vadd.f32 %v356_v51, %v348_v56  ;;  %v980_v0 = vadd.f32 %v364_v52, %v350_v57  ;;  %v289_v1 = vpop.f32.mrb[3].mxu0  ;;  %v329_v2 = vpop.f32.mrb[3].mxu1 }
 0x183   :  { %v982_v3 = vadd.f32 %v360_v55, %v349_v60 }
 0x184   :  { %v371_v4 = vand.u32 2147483647, %v978_v63  ;;  %v374_v5 = vand.u32 2139095040, %v978_v63  ;;  %v579_v6 = vand.u32 2147483647, %v980_v0  ;;  %v582_v7 = vand.u32 2139095040, %v980_v0 }
 0x185   :  { %v478_v10 = vand.u32 2139095040, %v982_v3  ;;  %v475_v13 = vand.u32 2147483647, %v982_v3 }
 0x186   :  { %v375_v8 = vshrl.u32 %v374_v5, 23  ;;  %v378_v9 = vand.u32 8388607, %v371_v4  ;;  %v583_v11 = vshrl.u32 %v582_v7, 23  ;;  %v586_v12 = vand.u32 8388607, %v579_v6 }
 0x187   :  { %v479_v15 = vshrl.u32 %v478_v10, 23  ;;  %v996_v22 = vand.u32 8388607, %v475_v13 }
 0x188   :  { %v731_v14 = vadd.s32 4294967169, %v375_v8  ;;  %v379_v16 = vor.u32 8388608, %v378_v9  ;;  %v739_v17 = vadd.s32 4294967169, %v583_v11  ;;  %v587_v20 = vor.u32 8388608, %v586_v12 }
 0x189   :  { %v735_v19 = vadd.s32 4294967169, %v479_v15  ;;  %v483_v32 = vor.u32 8388608, %v996_v22 }
 0x18a   :  { %v381_v18 = vadd.s32 1, %v731_v14  ;;  %v589_v21 = vadd.s32 1, %v739_v17  ;;  %v998_v25 = vshll.u32 %v379_v16, 8  ;;  %v1002_v31 = vshll.u32 %v587_v20, 8 }
 0x18b   :  { %v485_v23 = vadd.s32 1, %v735_v19 }
 0x18c   :  { %vm382_vm3 = vcmp.gt.s32.totalorder %v381_v18, 0  ;;  %vm590_vm4 = vcmp.gt.s32.totalorder %v589_v21, 0 }
 0x18d   :  { %v383_v24 = vsel %vm382_vm3, %v381_v18, 0  ;;  %v591_v28 = vsel %vm590_vm4, %v589_v21, 0  ;;  %vm486_vm5 = vcmp.gt.s32.totalorder %v485_v23, 0 }
 0x18e   :  { %v384_v26 = vshrl.u32 %v383_v24, 5  ;;  %v385_v27 = vand.u32 31, %v383_v24  ;;  %v1000_v29 = vshrl.u32 %v591_v28, 5  ;;  %v593_v30 = vand.u32 31, %v591_v28 }
 0x18f   :  { %v1007_v38 = vsel %vm486_vm5, %v485_v23, 0 }
 0x190   :  { %v386_v33 = vsub.s32 32, %v385_v27  ;;  %v388_v35 = vshll.u32 %v896_v34, %v385_v27  ;;  %v391_v37 = vshll.u32 %v897_v36, %v385_v27  ;;  %v394_v40 = vshll.u32 %v898_v39, %v385_v27 }
 0x191   :  { %v397_v42 = vshll.u32 %v899_v41, %v385_v27  ;;  %v400_v44 = vshll.u32 %v900_v43, %v385_v27  ;;  %vm403_vm6 = vcmp.lt.s32.totalorder %v384_v26, 1  ;;  %vm404_vm7 = vcmp.lt.s32.totalorder %v384_v26, 2 }
 0x192   :  { %v389_v45 = vshrl.u32 %v897_v36, %v386_v33  ;;  %v392_v46 = vshrl.u32 %v898_v39, %v386_v33  ;;  %v395_v47 = vshrl.u32 %v899_v41, %v386_v33  ;;  %v387_v48 = vshrl.u32 %v896_v34, %v386_v33 }
 0x193   :  { %v398_v49 = vshrl.u32 %v900_v43, %v386_v33  ;;  %v401_v51 = vshrl.u32 %v901_v50, %v386_v33  ;;  %vm405_vm8 = vcmp.lt.s32.totalorder %v384_v26, 3  ;;  %v594_v55 = vsub.s32 32, %v593_v30 }
 0x194   :  { %v390_v52 = vor.u32 %v389_v45, %v388_v35  ;;  %v393_v53 = vor.u32 %v392_v46, %v391_v37  ;;  %v396_v54 = vor.u32 %v395_v47, %v394_v40  ;;  %vm406_vm9 = vcmp.lt.s32.totalorder %v384_v26, 4 }
 0x195   :  { %v399_v56 = vor.u32 %v398_v49, %v397_v42  ;;  %v402_v57 = vor.u32 %v401_v51, %v400_v44  ;;  %v596_v58 = vshll.u32 %v896_v34, %v593_v30  ;;  %v599_v7 = vshll.u32 %v897_v36, %v593_v30 }
 0x196   :  { %v407_v59 = vsel %vm403_vm6, %v387_v48, %v390_v52  ;;  %v408_v60 = vsel %vm406_vm9, %v396_v54, 2102212464  ;;  %v411_v61 = vsel %vm403_vm6, %v390_v52, %v393_v53  ;;  %v415_v62 = vsel %vm403_vm6, %v393_v53, %v396_v54 }
 0x197   :  { %v409_v1 = vsel %vm405_vm8, %v393_v53, %v408_v60  ;;  %v412_v2 = vsel %vm406_vm9, %v399_v56, 920167782  ;;  %v416_v5 = vsel %vm406_vm9, %v402_v57, 1326507024  ;;  %v595_v10 = vshrl.u32 %v896_v34, %v594_v55 }
 0x198   :  { %v413_v8 = vsel %vm405_vm8, %v396_v54, %v412_v2  ;;  %v417_v9 = vsel %vm405_vm8, %v399_v56, %v416_v5  ;;  %v597_v11 = vshrl.u32 %v897_v36, %v594_v55  ;;  %v410_v12 = vsel %vm404_vm7, %v407_v59, %v409_v1 }
 0x199   :  { %v414_v14 = vsel %vm404_vm7, %v411_v61, %v413_v8  ;;  %v418_v15 = vsel %vm404_vm7, %v415_v62, %v417_v9  ;;  %v600_v16 = vshrl.u32 %v898_v39, %v594_v55  ;;  %v602_v24 = vshll.u32 %v898_v39, %v593_v30 }
 0x19a   :  { %v1033_v17 = vmul.u32.u64.low %v998_v25, %v418_v15  ;;  %v1034_v18 = vmul.u32.u64.high %v998_v25, %v418_v15, %v1033_v17  ;;  %v1037_v19 = vmul.u32.u64.low %v998_v25, %v414_v14  ;;  %v1038_v20 = vmul.u32.u64.high %v998_v25, %v414_v14, %v1037_v19 }
 0x19b   :  { %v598_v21 = vor.u32 %v597_v11, %v596_v58  ;;  %v601_v23 = vor.u32 %v600_v16, %v599_v7  ;;  %v603_v27 = vshrl.u32 %v899_v41, %v594_v55  ;;  %v426_v26 = vmul.u32 %v998_v25, %v410_v12 }
 0x19c   :  { %v605_v28 = vshll.u32 %v899_v41, %v593_v30  ;;  %v606_v33 = vshrl.u32 %v900_v43, %v594_v55  ;;  %v609_v35 = vshrl.u32 %v901_v50, %v594_v55  ;;  %v608_v40 = vshll.u32 %v900_v43, %v593_v30 }
 0x19d   :  { %v604_v37 = vor.u32 %v603_v27, %v602_v24  ;;  %vm611_vm10 = vcmp.lt.s32.totalorder %v1000_v29, 1  ;;  %vm612_vm11 = vcmp.lt.s32.totalorder %v1000_v29, 2  ;;  %vm428_vm12 = vc.u32 %v1034_v18, %v1037_v19 }
 0x19e   :  { %v429_v42 = vadd.s32 1, %v1038_v20  ;;  %v607_v44 = vor.u32 %v606_v33, %v605_v28  ;;  %vm613_vm13 = vcmp.lt.s32.totalorder %v1000_v29, 3  ;;  %v610_v25 = vor.u32 %v609_v35, %v608_v40 }
 0x19f   :  { %vm614_vm14 = vcmp.lt.s32.totalorder %v1000_v29, 4  ;;  %v615_v45 = vsel %vm611_vm10, %v595_v10, %v598_v21  ;;  %v619_v46 = vsel %vm611_vm10, %v598_v21, %v601_v23  ;;  %v623_v49 = vsel %vm611_vm10, %v601_v23, %v604_v37 }
 0x1a0   :  { %v430_v47 = vsel %vm428_vm12, %v429_v42, %v1038_v20  ;;  %v616_v30 = vsel %vm614_vm14, %v604_v37, 2102212464  ;;  %v620_v48 = vsel %vm614_vm14, %v607_v44, 920167782  ;;  %v624_v54 = vsel %vm614_vm14, %v610_v25, 1326507024 }
 0x1a1   :  { %v431_v51 = vadd.s32 %v430_v47, %v426_v26  ;;  %v617_v52 = vsel %vm613_vm13, %v601_v23, %v616_v30  ;;  %v621_v53 = vsel %vm613_vm13, %v604_v37, %v620_v48  ;;  %v625_v57 = vsel %vm613_vm13, %v607_v44, %v624_v54 }
 0x1a2   :  { %v618_v55 = vsel %vm612_vm11, %v615_v45, %v617_v52  ;;  %v622_v56 = vsel %vm612_vm11, %v619_v46, %v621_v53  ;;  %v1061_v58 = vshrl.u32 %v1007_v38, 5  ;;  %v626_v60 = vsel %vm612_vm11, %v623_v49, %v625_v57 }
 0x1a3   :  { %v432_v59 = vadd.s32 536870912, %v431_v51  ;;  %v1066_v61 = vmul.u32.u64.low %v1002_v31, %v622_v56  ;;  %v1067_v62 = vmul.u32.u64.high %v1002_v31, %v622_v56, %v1066_v61  ;;  %v489_v5 = vand.u32 31, %v1007_v38 }
 0x1a4   :  { %v1071_v1 = vmul.u32.u64.low %v1002_v31, %v626_v60  ;;  %v1072_v2 = vmul.u32.u64.high %v1002_v31, %v626_v60, %v1071_v1  ;;  %v1079_v8 = vshll.u32 %v483_v32, 8  ;;  %v634_v29 = vmul.u32 %v1002_v31, %v618_v55 }
 0x1a5   :  { %v1075_v7 = vshrl.u32 %v432_v59, 30  ;;  %v490_v9 = vsub.s32 32, %v489_v5  ;;  %v492_v10 = vshll.u32 %v896_v34, %v489_v5  ;;  %vm507_vm15 = vcmp.lt.s32.totalorder %v1061_v58, 1 }
 0x1a6   :  { %v637_v12 = vadd.s32 1, %v1067_v62  ;;  %v495_v14 = vshll.u32 %v897_v36, %v489_v5  ;;  %v498_v38 = vshll.u32 %v898_v39, %v489_v5  ;;  %vm636_vm0 = vc.u32 %v1072_v2, %v1066_v61 }
 0x1a7   :  { %v434_v11 = vshll.u32 %v1075_v7, 30  ;;  %v493_v22 = vshrl.u32 %v897_v36, %v490_v9  ;;  %v501_v31 = vshll.u32 %v899_v41, %v489_v5  ;;  %v504_v32 = vshll.u32 %v900_v43, %v489_v5 }
 0x1a8   :  { %v638_v16 = vsel %vm636_vm0, %v637_v12, %v1067_v62  ;;  %v496_v17 = vshrl.u32 %v898_v39, %v490_v9  ;;  %v499_v20 = vshrl.u32 %v899_v41, %v490_v9  ;;  %v502_v24 = vshrl.u32 %v900_v43, %v490_v9 }
 0x1a9   :  { %v435_v15 = vsub.s32 %v431_v51, %v434_v11  ;;  %v639_v21 = vadd.s32 %v638_v16, %v634_v29  ;;  %v494_v23 = vor.u32 %v493_v22, %v492_v10  ;;  %v505_v27 = vshrl.u32 %v901_v50, %v490_v9 }
 0x1aa   :  { %v497_v28 = vor.u32 %v496_v17, %v495_v14  ;;  %v500_v36 = vor.u32 %v499_v20, %v498_v38  ;;  %vm509_vm1 = vcmp.lt.s32.totalorder %v1061_v58, 3  ;;  %v503_v35 = vor.u32 %v502_v24, %v501_v31 }
 0x1ab   :  { %v437_v26 = vsub.s32 0, %v435_v15  ;;  %v640_v33 = vadd.s32 536870912, %v639_v21  ;;  %v506_v37 = vor.u32 %v505_v27, %v504_v32  ;;  %vm510_vm2 = vcmp.lt.s32.totalorder %v1061_v58, 4 }
 0x1ac   :  { %v512_v39 = vsel %vm510_vm2, %v500_v36, 2102212464  ;;  %v515_v41 = vsel %vm507_vm15, %v494_v23, %v497_v28  ;;  %v519_v43 = vsel %vm507_vm15, %v497_v28, %v500_v36  ;;  %v491_v50 = vshrl.u32 %v896_v34, %v490_v9 }
 0x1ad   :  { %v732_v40 = vmin.u32 %v437_v26, %v435_v15  ;;  %v1104_v42 = vshrl.u32 %v640_v33, 30  ;;  %v516_v44 = vsel %vm510_vm2, %v503_v35, 920167782  ;;  %v520_v25 = vsel %vm510_vm2, %v506_v37, 1326507024 }
 0x1ae   :  { %vm508_vm3 = vcmp.lt.s32.totalorder %v1061_v58, 2  ;;  %v517_v46 = vsel %vm509_vm1, %v500_v36, %v516_v44  ;;  %v521_v47 = vsel %vm509_vm1, %v503_v35, %v520_v25  ;;  %v511_v48 = vsel %vm507_vm15, %v491_v50, %v494_v23 }
 0x1af   :  { %v439_v45 = vclz %v732_v40  ;;  %v642_v30 = vshll.u32 %v1104_v42, 30  ;;  %v518_v49 = vsel %vm508_vm3, %v515_v41, %v517_v46  ;;  %v522_v34 = vsel %vm508_vm3, %v519_v43, %v521_v47 }
 0x1b0   :  { %v513_v52 = vsel %vm509_vm1, %v497_v28, %v512_v39  ;;  %v1122_v53 = vmul.u32.u64.low %v1079_v8, %v522_v34  ;;  %v1123_v54 = vmul.u32.u64.high %v1079_v8, %v522_v34, %v1122_v53  ;;  %v427_v1 = vadd.s32 %v1037_v19, %v1034_v18 }
 0x1b1   :  { %v733_v51 = vadd.s32 4294967294, %v439_v45  ;;  %v643_v55 = vsub.s32 %v639_v21, %v642_v30  ;;  %v1126_v56 = vmul.u32.u64.low %v1079_v8, %v518_v49  ;;  %v1127_v57 = vmul.u32.u64.high %v1079_v8, %v518_v49, %v1126_v56 }
 0x1b2   :  { %v514_v62 = vsel %vm508_vm3, %v511_v48, %v513_v52  ;;  %v457_v36 = vsub.s32 4, %v1075_v7  ;;  %vm373_vm7 = vcmp.lt.s32.totalorder %v978_v63, 0  ;;  %vm1148_vm8 = vcmp.le.f32.partialorder %v371_v4, 0.7853982 }
 0x1b3   :  { %vm734_vm4 = vcmp.lt.s32.totalorder %v733_v51, 0  ;;  %v645_v60 = vsub.s32 0, %v643_v55  ;;  %vm532_vm5 = vc.u32 %v1123_v54, %v1126_v56  ;;  %v533_v10 = vadd.s32 1, %v1127_v57 }
 0x1b4   :  { %v442_v59 = vsel %vm734_vm4, 0, %v733_v51  ;;  %v530_v38 = vmul.u32 %v1079_v8, %v514_v62  ;;  %v458_v44 = vsel %vm373_vm7, %v457_v36, %v1075_v7  ;;  %v665_v49 = vsub.s32 4, %v1104_v42 }
 0x1b5   :  { %v443_v5 = vsub.s32 32, %v442_v59  ;;  %v447_v29 = vsub.s32 4294967266, %v442_v59  ;;  %v740_v9 = vmin.u32 %v645_v60, %v643_v55  ;;  %v444_v11 = vshll.u32 %v435_v15, %v442_v59 }
 0x1b6   :  { %v534_v58 = vsel %vm532_vm5, %v533_v10, %v1127_v57  ;;  %v635_v15 = vadd.s32 %v1066_v61, %v1072_v2  ;;  %v460_v4 = vsel %vm1148_vm8, 0, %v458_v44  ;;  %vm581_vm9 = vcmp.lt.s32.totalorder %v980_v0, 0 }
 0x1b7   :  { %v445_v12 = vshrl.u32 %v427_v1, %v443_v5  ;;  %v448_v14 = vadd.s32 127, %v447_v29  ;;  %v647_v22 = vclz %v740_v9  ;;  %v535_v16 = vadd.s32 %v534_v58, %v530_v38 }
 0x1b8   :  { %v464_v52 = vadd.s32 3, %v460_v4  ;;  %v666_v53 = vsel %vm581_vm9, %v665_v49, %v1104_v42  ;;  %vm1163_vm11 = vcmp.le.f32.partialorder %v579_v6, 0.7853982  ;;  %v531_v59 = vadd.s32 %v1126_v56, %v1123_v54 }
 0x1b9   :  { %v446_v31 = vor.u32 %v445_v12, %v444_v11  ;;  %v449_v32 = vshll.u32 %v448_v14, 23  ;;  %v741_v18 = vadd.s32 4294967294, %v647_v22  ;;  %v536_v17 = vadd.s32 536870912, %v535_v16 }
 0x1ba   :  { %v465_v29 = vand.u32 3, %v464_v52  ;;  %v668_v42 = vsel %vm1163_vm11, 0, %v666_v53  ;;  %vm463_vm15 = vweird.f32 %v978_v63  ;;  %vm1178_vm0 = vcmp.le.f32.partialorder %v475_v13, 0.7853982 }
 0x1bb   :  { %v450_v19 = vor.u32 4788187, %v449_v32  ;;  %vm742_vm6 = vcmp.lt.s32.totalorder %v741_v18, 0  ;;  %v453_v21 = vcvt.s32.f32 %v446_v31  ;;  %v1139_v24 = vshrl.u32 %v536_v17, 30 }
 0x1bc   :  { %v650_v23 = vsel %vm742_vm6, 0, %v741_v18  ;;  %vm470_vm12 = vcmp.eq.s32.totalorder %v465_v29, 2  ;;  %vm467_vm13 = vcmp.eq.s32.totalorder %v465_v29, 0  ;;  %v672_v58 = vadd.s32 3, %v668_v42 }
 0x1bd   :  { %v451_v20 = vand.u32 2147483647, %v450_v19  ;;  %v651_v27 = vsub.s32 32, %v650_v23  ;;  %v655_v8 = vsub.s32 4294967266, %v650_v23  ;;  %v538_v28 = vshll.u32 %v1139_v24, 30 }
 0x1be   :  { %v652_v33 = vshll.u32 %v643_v55, %v650_v23  ;;  %vm466_vm14 = vcmp.lt.s32.totalorder %v465_v29, 2  ;;  %v561_v23 = vsub.s32 4, %v1139_v24  ;;  %vm477_vm1 = vcmp.lt.s32.totalorder %v982_v3, 0 }
 0x1bf   :  { %v454_v26 = vmul.f32 %v453_v21, %v451_v20  ;;  %v653_v35 = vshrl.u32 %v635_v15, %v651_v27  ;;  %v656_v37 = vadd.s32 127, %v655_v8  ;;  %v539_v39 = vsub.s32 %v535_v16, %v538_v28 }
 0x1c0   :  { %v673_v20 = vand.u32 3, %v672_v58  ;;  %vm671_vm5 = vweird.f32 %v980_v0 }
 0x1c1   :  { %v455_v40 = vxor.u32 2147483648, %v454_v26  ;;  %v654_v41 = vor.u32 %v653_v35, %v652_v33  ;;  %v657_v43 = vshll.u32 %v656_v37, 23  ;;  %v541_v50 = vsub.s32 0, %v539_v39 }
 0x1c2   :  { %vm678_vm2 = vcmp.eq.s32.totalorder %v673_v20, 2  ;;  %v562_v33 = vsel %vm477_vm1, %v561_v23, %v1139_v24  ;;  %vm675_vm3 = vcmp.eq.s32.totalorder %v673_v20, 0  ;;  %vm674_vm4 = vcmp.lt.s32.totalorder %v673_v20, 2 }
 0x1c3   :  { %v456_v2 = vsel %vm373_vm7, %v455_v40, %v454_v26  ;;  %v658_v45 = vor.u32 4788187, %v657_v43  ;;  %v736_v46 = vmin.u32 %v541_v50, %v539_v39  ;;  %v661_v30 = vcvt.s32.f32 %v654_v41 }
 0x1c4   :  { %v459_v25 = vsel %vm1148_vm8, %v978_v63, %v456_v2 }
 0x1c5   :  { %805 = vcosq.f32 %v459_v25  ;;  %v659_v47 = vand.u32 2147483647, %v658_v45  ;;  %v543_v48 = vclz %v736_v46 }
 0x1c6   :  { %807 = vsinq.f32 %v459_v25 }
 0x1c7   :  { %v662_v34 = vmul.f32 %v661_v30, %v659_v47  ;;  %v737_v51 = vadd.s32 4294967294, %v543_v48 }
 0x1c9   :  { %v663_v7 = vxor.u32 2147483648, %v662_v34  ;;  %vm738_vm10 = vcmp.lt.s32.totalorder %v737_v51, 0 }
 0x1ca   :  { %v546_v60 = vsel %vm738_vm10, 0, %v737_v51 }
 0x1cb   :  { %v664_v57 = vsel %vm581_vm9, %v663_v7, %v662_v34  ;;  %v547_v1 = vsub.s32 32, %v546_v60  ;;  %v551_v5 = vsub.s32 4294967266, %v546_v60  ;;  %v548_v9 = vshll.u32 %v539_v39, %v546_v60 }
 0x1cc   :  { %v667_v62 = vsel %vm1163_vm11, %v980_v0, %v664_v57  ;;  %v564_v39 = vsel %vm1178_vm0, 0, %v562_v33  ;;  %vm567_vm9 = vweird.f32 %v982_v3 }
 0x1cd   :  { %809 = vcosq.f32 %v667_v62  ;;  %v549_v10 = vshrl.u32 %v531_v59, %v547_v1  ;;  %v552_v11 = vadd.s32 127, %v551_v5  ;;  %v568_v43 = vadd.s32 3, %v564_v39 }
 0x1ce   :  { %811 = vsinq.f32 %v667_v62 }
 0x1cf   :  { %v806_v6 = vpop.eup %805  ;;  %v550_v54 = vor.u32 %v549_v10, %v548_v9  ;;  %v553_v56 = vshll.u32 %v552_v11, 23  ;;  %v569_v24 = vand.u32 3, %v568_v43 }
 0x1d0   :  { %v808_v12 = vpop.eup %807  ;;  %v471_v14 = vxor.u32 2147483648, %v806_v6 }
 0x1d1   :  { %v468_v38 = vxor.u32 2147483648, %v808_v12  ;;  %v554_v31 = vor.u32 4788187, %v553_v56  ;;  %v557_v19 = vcvt.s32.f32 %v550_v54  ;;  %vm574_vm6 = vcmp.eq.s32.totalorder %v569_v24, 2 }
 0x1d2   :  { %v472_v22 = vsel %vm470_vm12, %v471_v14, %v808_v12  ;;  %vm571_vm7 = vcmp.eq.s32.totalorder %v569_v24, 0  ;;  %vm570_vm8 = vcmp.lt.s32.totalorder %v569_v24, 2 }
 0x1d3   :  { %v469_v32 = vsel %vm467_vm13, %v806_v6, %v468_v38  ;;  %v555_v18 = vand.u32 2147483647, %v554_v31 }
 0x1d4   :  { %v473_v16 = vsel %vm466_vm14, %v469_v32, %v472_v22 }
 0x1d5   :  { %v474_v17 = vsel %vm463_vm15, nan, %v473_v16  ;;  %v558_v21 = vmul.f32 %v557_v19, %v555_v18 }
 0x1d6   :  { %683 = vst [vmem:[#allocation7] sm:$0xff] %v474_v17 }
 0x1d7   :  { %v810_v15 = vpop.eup %809  ;;  %v559_v8 = vxor.u32 2147483648, %v558_v21 }
 0x1d8   :  { %v812_v27 = vpop.eup %811  ;;  %v679_v26 = vxor.u32 2147483648, %v810_v15 }
 0x1d9   :  { %v676_v63 = vxor.u32 2147483648, %v812_v27  ;;  %v560_v36 = vsel %vm477_vm1, %v559_v8, %v558_v21 }
 0x1da   :  { %v680_v35 = vsel %vm678_vm2, %v679_v26, %v812_v27  ;;  %v563_v37 = vsel %vm1178_vm0, %v982_v3, %v560_v36 }
 0x1db   :  { %v677_v40 = vsel %vm675_vm3, %v810_v15, %v676_v63  ;;  %813 = vcosq.f32 %v563_v37 }
 0x1dc   :  { %v681_v13 = vsel %vm674_vm4, %v677_v40, %v680_v35  ;;  %815 = vsinq.f32 %v563_v37 }
 0x1dd   :  { %v682_v41 = vsel %vm671_vm5, nan, %v681_v13 }
 0x1de   :  { %685 = vst [vmem:[#allocation7 + $0x10] sm:$0xff] %v682_v41 }
 0x1e5   :  { %v814_v61 = vpop.eup %813 }
 0x1e6   :  { %v816_v2 = vpop.eup %815  ;;  %v575_v50 = vxor.u32 2147483648, %v814_v61 }
 0x1e7   :  { %v572_v44 = vxor.u32 2147483648, %v816_v2 }
 0x1e8   :  { %v576_v25 = vsel %vm574_vm6, %v575_v50, %v816_v2 }
 0x1e9   :  { %v573_v0 = vsel %vm571_vm7, %v814_v61, %v572_v44 }
 0x1ea   :  { %v577_v45 = vsel %vm570_vm8, %v573_v0, %v576_v25 }
 0x1eb   :  { %v578_v46 = vsel %vm567_vm9, nan, %v577_v45 }
 0x1ec   :  { %684 = vst [vmem:[#allocation7 + $0x8] sm:$0xff] %v578_v46 }
 0x1ed   :  { %872 = shalt.err (!%p869_p6)
}
 0x1ee   :  { %s873_s23 = scalar_lea.hbm %s1207_s4, 384 }
 0x1ef   :  { %p874_p7 = scmp.ne.s32.totalorder %s1207_s4, %s873_s23  ;;  %p877_p8 = scmp.lt.u32.totalorder %s873_s23, %s1207_s4 }
 0x1f1   :  { %p879_p9 = pnand %p877_p8, %p874_p7 }
 0x1f3   :  { %882 = shalt.err (!%p879_p9)
}
 0x1f4   :  { %695 = dma.vmem_to_hbm [thread:$0]  %s693_s19, 384, %s1207_s4, [#allocation4]  }
 0x1f5   :  { %887 = dma.done.wait [#allocation4], 384  }
 0x1f6   :  { %888 = vsyncadd [#allocation4], 4294966912 }
 0x1f7   :  { %699 = vsyncpa [#allocation3], 1 }
 0x1f8   :  { %700 = vsyncpa [#allocation6], 1 }
 0x1f9   :  { %701 = vsyncpa [#allocation4], 1 }

</bundles_post_ra>
